<compile_context>
chip_gen: v6e
topology: v6e:2x2x1
jax: 0.10.0
libtpu: 0.0.40
codegen_flags: <defaults>
</compile_context>

<pallas_src>
import math

import jax
import jax.numpy as jnp
import numpy as np
from jax import lax
from jax.experimental import pallas as pl
from jax.experimental.pallas import tpu as pltpu


def phrase_fwd_kernel(emb_ref,      # (B, T_tile, E)
                      w_big_ref,    # (E+H, 8H)  [fwd | bwd], rows = [W_ih ; W_hh]
                      b2_ref,       # (2, 4H)    row 0 = fwd bias, row 1 = bwd bias
                      w_out_ref,    # (2H, V)
                      b_out_ref,    # (1, V)
                      out_ref):     # (T_tile, V)
    B, Tt, E = emb_ref.shape
    H = w_out_ref.shape[0] // 2
    H4 = 4 * H

    # ---- hoist loop-invariant loads / broadcasts out of the recurrence ----
    w_big = w_big_ref[...]                                        # (E+H, 8H)
    bias = jnp.concatenate(
        [jnp.broadcast_to(b2_ref[0:1, :], (Tt, H4)),
         jnp.broadcast_to(b2_ref[1:2, :], (Tt, H4))], axis=0)     # (2Tt, 4H)

    def step(s, h, c):
        # Stack forward (emb[s]) and reverse (emb[B-1-s]) inputs on sublanes,
        # append the packed hidden state on lanes -> single fused MXU matmul.
        x = jnp.concatenate([emb_ref[s], emb_ref[B - 1 - s]], axis=0)   # (2Tt, E)
        xh = jnp.concatenate([x, h], axis=1)                            # (2Tt, E+H)
        gfull = jnp.dot(xh, w_big, preferred_element_type=jnp.float32)  # (2Tt, 8H)
        # forward gates = top-left quadrant, reverse gates = bottom-right.
        gates = jnp.concatenate([gfull[:Tt, :H4], gfull[Tt:, H4:]],
                                axis=0) + bias                          # (2Tt, 4H)
        # gate columns are pre-permuted to [i, f, o, g]:
        sig = jax.nn.sigmoid(gates[:, :3 * H])
        g_g = jnp.tanh(gates[:, 3 * H:])
        i_g = sig[:, :H]
        f_g = sig[:, H:2 * H]
        o_g = sig[:, 2 * H:3 * H]
        c_new = f_g * c + i_g * g_g
        h_new = o_g * jnp.tanh(c_new)
        return h_new, c_new

    h0 = jnp.zeros((2 * Tt, H), jnp.float32)
    c0 = jnp.zeros((2 * Tt, H), jnp.float32)

    if B <= 16:
        # fully unrolled straight-line recurrence (best LLO scheduling, short B)
        h, c = h0, c0
        for s in range(B):
            h, c = step(s, h, c)
        c_fin = c
    else:
        _, c_fin = lax.fori_loop(0, B, lambda s, hc: step(s, *hc), (h0, c0))

    # output Linear on cat([c_fwd, c_bwd], dim=1) — single fused projection.
    c_cat = jnp.concatenate([c_fin[:Tt, :], c_fin[Tt:, :]], axis=1)   # (Tt, 2H)
    out_ref[...] = (jnp.dot(c_cat, w_out_ref[...],
                            preferred_element_type=jnp.float32)
                    + b_out_ref[...])


def phrase_model_forward(tokens, params, *, t_tile=None):
    # Embedding lookup (gather) is glue; the recurrence + matmuls are in-kernel.
    embed = params["emb"][tokens]                      # (B, T, E) float32
    B, T, E = embed.shape
    H = params["w_hh_f"].shape[0]
    V = params["w_out"].shape[1]

    # Host-side weight fusion:
    #  * per-direction: gates = [x | h] @ vstack(W_ih, W_hh)   -> (E+H, 4H)
    #  * both directions side by side                          -> (E+H, 8H)
    #  * gate columns permuted [i,f,g,o] -> [i,f,o,g] so sigmoid covers 3H lanes.
    perm = np.concatenate([np.arange(0, 2 * H),
                           np.arange(3 * H, 4 * H),
                           np.arange(2 * H, 3 * H)])
    w_f = jnp.concatenate([params["w_ih_f"], params["w_hh_f"]], axis=0)[:, perm]
    w_b = jnp.concatenate([params["w_ih_b"], params["w_hh_b"]], axis=0)[:, perm]
    w_big = jnp.concatenate([w_f, w_b], axis=1)                       # (E+H, 8H)
    b2 = jnp.concatenate([params["b_f"][:, perm],
                          params["b_b"][:, perm]], axis=0)            # (2, 4H)

    if t_tile is None:
        t_tile = T if T <= 256 else 256
    assert T % t_tile == 0, "T must be divisible by the T tile"
    grid = (T // t_tile,)

    # TODO(synk): for realistic dict_size, add a lane-dense V tile (multiple of
    # 128) and stream emb from HBM with manual double-buffered DMA (v7x 64 MiB).
    return pl.pallas_call(
        phrase_fwd_kernel,
        out_shape=jax.ShapeDtypeStruct((T, V), jnp.float32),
        grid=grid,
        in_specs=[
            pl.BlockSpec((B, t_tile, E), lambda t: (0, t, 0)),
            pl.BlockSpec((E + H, 8 * H), lambda t: (0, 0)),
            pl.BlockSpec((2, 4 * H), lambda t: (0, 0)),
            pl.BlockSpec((2 * H, V), lambda t: (0, 0)),
            pl.BlockSpec((1, V), lambda t: (0, 0)),
        ],
        out_specs=pl.BlockSpec((t_tile, V), lambda t: (t, 0)),
        compiler_params=pltpu.CompilerParams(
            dimension_semantics=("parallel",)),
    )(embed, w_big, b2, params["w_out"], params["b_out"])


def reference_forward(tokens, params):
    """Pure-JAX reference mirroring the PyTorch forward semantics."""
    embed = params["emb"][tokens]                      # (B, T, E)
    B, T, E = embed.shape
    H = params["w_hh_f"].shape[0]

    def step(x, h, c, w_ih, w_hh, b):
        gates = x @ w_ih + h @ w_hh + b
        i = jax.nn.sigmoid(gates[:, :H])
        f = jax.nn.sigmoid(gates[:, H:2 * H])
        g = jnp.tanh(gates[:, 2 * H:3 * H])
        o = jax.nn.sigmoid(gates[:, 3 * H:])
        c = f * c + i * g
        h = o * jnp.tanh(c)
        return h, c

    h_f = jnp.zeros((T, H), jnp.float32)
    c_f = jnp.zeros((T, H), jnp.float32)
    h_b = jnp.zeros((T, H), jnp.float32)
    c_b = jnp.zeros((T, H), jnp.float32)
    for s in range(B):
        h_f, c_f = step(embed[s], h_f, c_f,
                        params["w_ih_f"], params["w_hh_f"], params["b_f"])
        h_b, c_b = step(embed[B - 1 - s], h_b, c_b,
                        params["w_ih_b"], params["w_hh_b"], params["b_b"])
    c_cat = jnp.concatenate([c_f, c_b], axis=1)        # (T, 2H)
    return c_cat @ params["w_out"] + params["b_out"]   # (T, V)


def init_params(key, emb_size, dict_size, hid_size):
    ks = jax.random.split(key, 12)
    stdv = 1.0 / math.sqrt(hid_size)

    def u(k, shape):
        return jax.random.uniform(k, shape, jnp.float32, -stdv, stdv)

    return {
        "emb": jax.random.normal(ks[0], (dict_size, emb_size), jnp.float32),
        # forward-direction LSTM (weights pre-transposed to (in, 4H), PyTorch
        # gate order i,f,g,o; bias = b_ih + b_hh)
        "w_ih_f": u(ks[1], (emb_size, 4 * hid_size)),
        "w_hh_f": u(ks[2], (hid_size, 4 * hid_size)),
        "b_f": u(ks[3], (1, 4 * hid_size)) + u(ks[4], (1, 4 * hid_size)),
        # reverse-direction LSTM
        "w_ih_b": u(ks[5], (emb_size, 4 * hid_size)),
        "w_hh_b": u(ks[6], (hid_size, 4 * hid_size)),
        "b_b": u(ks[7], (1, 4 * hid_size)) + u(ks[8], (1, 4 * hid_size)),
        # output Linear, stored as (2H, V) = W.T
        "w_out": u(ks[9], (2 * hid_size, dict_size)),
        "b_out": u(ks[10], (1, dict_size)),
    }


if __name__ == "__main__":
    EMB, DICT, HID = 32, 64, 32       # emb_size, dict_size, hid_size
    B, T = 2, 8                        # batch, sequence length

    key = jax.random.PRNGKey(0)
    pkey, tkey = jax.random.split(key)
    params = init_params(pkey, EMB, DICT, HID)
    tokens = jax.random.randint(tkey, (B, T), 0, DICT, dtype=jnp.int32)

    out = phrase_model_forward(tokens, params)
    out = jax.block_until_ready(out)                   # (T, DICT) = (8, 64)

    ref = reference_forward(tokens, params)
    np.testing.assert_allclose(np.asarray(out), np.asarray(ref),
                               rtol=1e-5, atol=2e-5)
    print("KERNEL_OK")
</pallas_src>

<mosaic_0001>
module attributes {stable_mosaic.version = 11 : i64} {
  func.func @phrase_fwd_kernel(%arg0: i32, %arg1: memref<2x8x32xf32, #tpu.memory_space<vmem>>, %arg2: memref<64x256xf32, #tpu.memory_space<vmem>>, %arg3: memref<2x128xf32, #tpu.memory_space<vmem>>, %arg4: memref<64x64xf32, #tpu.memory_space<vmem>>, %arg5: memref<1x64xf32, #tpu.memory_space<vmem>>, %arg6: memref<8x64xf32, #tpu.memory_space<vmem>>) attributes {dimension_semantics = [#tpu.dimension_semantics<parallel>], iteration_bounds = array<i64: 1>, scalar_prefetch = 0 : i64, scratch_operands = 0 : i64, tpu.core_type = #tpu.core_type<tc>, window_params = [{transform_indices = @transform_0, window_bounds = array<i64: 2, 8, 32>}, {pipeline_mode = #tpu.pipeline_mode<synchronous>, transform_indices = @transform_1, window_bounds = array<i64: 64, 256>}, {pipeline_mode = #tpu.pipeline_mode<synchronous>, transform_indices = @transform_2, window_bounds = array<i64: 2, 128>}, {pipeline_mode = #tpu.pipeline_mode<synchronous>, transform_indices = @transform_3, window_bounds = array<i64: 64, 64>}, {pipeline_mode = #tpu.pipeline_mode<synchronous>, transform_indices = @transform_4, window_bounds = array<i64: 1, 64>}, {transform_indices = @transform_5, window_bounds = array<i64: 8, 64>}]} {
    %c0 = arith.constant 0 : index
    %c0_0 = arith.constant 0 : index
    %0 = vector.load %arg2[%c0, %c0_0] : memref<64x256xf32, #tpu.memory_space<vmem>>, vector<64x256xf32>
    %c0_1 = arith.constant 0 : index
    %c0_2 = arith.constant 0 : index
    %1 = vector.load %arg3[%c0_1, %c0_2] : memref<2x128xf32, #tpu.memory_space<vmem>>, vector<1x128xf32>
    %2 = vector.shape_cast %1 : vector<1x128xf32> to vector<1x128xf32>
    %3 = vector.broadcast %2 : vector<1x128xf32> to vector<8x128xf32>
    %c1 = arith.constant 1 : index
    %c0_3 = arith.constant 0 : index
    %4 = vector.load %arg3[%c1, %c0_3] : memref<2x128xf32, #tpu.memory_space<vmem>>, vector<1x128xf32>
    %5 = vector.shape_cast %4 : vector<1x128xf32> to vector<1x128xf32>
    %6 = vector.broadcast %5 : vector<1x128xf32> to vector<8x128xf32>
    %7 = tpu.concatenate %3, %6 in 0 : vector<8x128xf32>, vector<8x128xf32> -> vector<16x128xf32>
    %cst = arith.constant 0.000000e+00 : f32
    %8 = vector.broadcast %cst : f32 to vector<16x32xf32>
    %cst_4 = arith.constant 0.000000e+00 : f32
    %9 = vector.broadcast %cst_4 : f32 to vector<16x32xf32>
    %c0_5 = arith.constant 0 : index
    %c0_6 = arith.constant 0 : index
    %c0_7 = arith.constant 0 : index
    %10 = vector.load %arg1[%c0_5, %c0_6, %c0_7] : memref<2x8x32xf32, #tpu.memory_space<vmem>>, vector<1x8x32xf32>
    %11 = vector.shape_cast %10 : vector<1x8x32xf32> to vector<8x32xf32>
    %c1_8 = arith.constant 1 : index
    %c0_9 = arith.constant 0 : index
    %c0_10 = arith.constant 0 : index
    %12 = vector.load %arg1[%c1_8, %c0_9, %c0_10] : memref<2x8x32xf32, #tpu.memory_space<vmem>>, vector<1x8x32xf32>
    %13 = vector.shape_cast %12 : vector<1x8x32xf32> to vector<8x32xf32>
    %14 = tpu.concatenate %11, %13 in 0 : vector<8x32xf32>, vector<8x32xf32> -> vector<16x32xf32>
    %15 = tpu.concatenate %14, %8 in 1 : vector<16x32xf32>, vector<16x32xf32> -> vector<16x64xf32>
    %cst_11 = arith.constant dense<0.000000e+00> : vector<16x256xf32>
    %16 = tpu.matmul %15, %0, %cst_11 {dimension_numbers = #tpu.dot_dimension_numbers<[1], [0], [0], [1], [0, 0, 1, 1], [], []>} : vector<16x64xf32>, vector<64x256xf32>, vector<16x256xf32> -> vector<16x256xf32>
    %17 = vector.extract_strided_slice %16 {offsets = [0, 0], sizes = [8, 128], strides = [1, 1]} : vector<16x256xf32> to vector<8x128xf32>
    %18 = vector.extract_strided_slice %16 {offsets = [8, 128], sizes = [8, 128], strides = [1, 1]} : vector<16x256xf32> to vector<8x128xf32>
    %19 = tpu.concatenate %17, %18 in 0 : vector<8x128xf32>, vector<8x128xf32> -> vector<16x128xf32>
    %20 = arith.addf %19, %7 : vector<16x128xf32>
    %21 = vector.extract_strided_slice %20 {offsets = [0, 0], sizes = [16, 96], strides = [1, 1]} : vector<16x128xf32> to vector<16x96xf32>
    %22 = arith.negf %21 : vector<16x96xf32>
    %23 = math.exp %22 : vector<16x96xf32>
    %cst_12 = arith.constant 1.000000e+00 : f32
    %24 = vector.broadcast %cst_12 : f32 to vector<16x96xf32>
    %25 = arith.addf %24, %23 : vector<16x96xf32>
    %26 = arith.divf %24, %25 : vector<16x96xf32>
    %27 = vector.extract_strided_slice %20 {offsets = [0, 96], sizes = [16, 32], strides = [1, 1]} : vector<16x128xf32> to vector<16x32xf32>
    %28 = math.tanh %27 : vector<16x32xf32>
    %29 = vector.extract_strided_slice %26 {offsets = [0, 0], sizes = [16, 32], strides = [1, 1]} : vector<16x96xf32> to vector<16x32xf32>
    %30 = vector.extract_strided_slice %26 {offsets = [0, 32], sizes = [16, 32], strides = [1, 1]} : vector<16x96xf32> to vector<16x32xf32>
    %31 = vector.extract_strided_slice %26 {offsets = [0, 64], sizes = [16, 32], strides = [1, 1]} : vector<16x96xf32> to vector<16x32xf32>
    %32 = arith.mulf %30, %9 : vector<16x32xf32>
    %33 = arith.mulf %29, %28 : vector<16x32xf32>
    %34 = arith.addf %32, %33 : vector<16x32xf32>
    %35 = math.tanh %34 : vector<16x32xf32>
    %36 = arith.mulf %31, %35 : vector<16x32xf32>
    %c1_13 = arith.constant 1 : index
    %c0_14 = arith.constant 0 : index
    %c0_15 = arith.constant 0 : index
    %37 = vector.load %arg1[%c1_13, %c0_14, %c0_15] : memref<2x8x32xf32, #tpu.memory_space<vmem>>, vector<1x8x32xf32>
    %38 = vector.shape_cast %37 : vector<1x8x32xf32> to vector<8x32xf32>
    %c0_16 = arith.constant 0 : index
    %c0_17 = arith.constant 0 : index
    %c0_18 = arith.constant 0 : index
    %39 = vector.load %arg1[%c0_16, %c0_17, %c0_18] : memref<2x8x32xf32, #tpu.memory_space<vmem>>, vector<1x8x32xf32>
    %40 = vector.shape_cast %39 : vector<1x8x32xf32> to vector<8x32xf32>
    %41 = tpu.concatenate %38, %40 in 0 : vector<8x32xf32>, vector<8x32xf32> -> vector<16x32xf32>
    %42 = tpu.concatenate %41, %36 in 1 : vector<16x32xf32>, vector<16x32xf32> -> vector<16x64xf32>
    %cst_19 = arith.constant dense<0.000000e+00> : vector<16x256xf32>
    %43 = tpu.matmul %42, %0, %cst_19 {dimension_numbers = #tpu.dot_dimension_numbers<[1], [0], [0], [1], [0, 0, 1, 1], [], []>} : vector<16x64xf32>, vector<64x256xf32>, vector<16x256xf32> -> vector<16x256xf32>
    %44 = vector.extract_strided_slice %43 {offsets = [0, 0], sizes = [8, 128], strides = [1, 1]} : vector<16x256xf32> to vector<8x128xf32>
    %45 = vector.extract_strided_slice %43 {offsets = [8, 128], sizes = [8, 128], strides = [1, 1]} : vector<16x256xf32> to vector<8x128xf32>
    %46 = tpu.concatenate %44, %45 in 0 : vector<8x128xf32>, vector<8x128xf32> -> vector<16x128xf32>
    %47 = arith.addf %46, %7 : vector<16x128xf32>
    %48 = vector.extract_strided_slice %47 {offsets = [0, 0], sizes = [16, 96], strides = [1, 1]} : vector<16x128xf32> to vector<16x96xf32>
    %49 = arith.negf %48 : vector<16x96xf32>
    %50 = math.exp %49 : vector<16x96xf32>
    %cst_20 = arith.constant 1.000000e+00 : f32
    %51 = vector.broadcast %cst_20 : f32 to vector<16x96xf32>
    %52 = arith.addf %51, %50 : vector<16x96xf32>
    %53 = arith.divf %51, %52 : vector<16x96xf32>
    %54 = vector.extract_strided_slice %47 {offsets = [0, 96], sizes = [16, 32], strides = [1, 1]} : vector<16x128xf32> to vector<16x32xf32>
    %55 = math.tanh %54 : vector<16x32xf32>
    %56 = vector.extract_strided_slice %53 {offsets = [0, 0], sizes = [16, 32], strides = [1, 1]} : vector<16x96xf32> to vector<16x32xf32>
    %57 = vector.extract_strided_slice %53 {offsets = [0, 32], sizes = [16, 32], strides = [1, 1]} : vector<16x96xf32> to vector<16x32xf32>
    %58 = arith.mulf %57, %34 : vector<16x32xf32>
    %59 = arith.mulf %56, %55 : vector<16x32xf32>
    %60 = arith.addf %58, %59 : vector<16x32xf32>
    %61 = vector.extract_strided_slice %60 {offsets = [0, 0], sizes = [8, 32], strides = [1, 1]} : vector<16x32xf32> to vector<8x32xf32>
    %62 = vector.extract_strided_slice %60 {offsets = [8, 0], sizes = [8, 32], strides = [1, 1]} : vector<16x32xf32> to vector<8x32xf32>
    %63 = tpu.concatenate %61, %62 in 1 : vector<8x32xf32>, vector<8x32xf32> -> vector<8x64xf32>
    %c0_21 = arith.constant 0 : index
    %c0_22 = arith.constant 0 : index
    %64 = vector.load %arg4[%c0_21, %c0_22] : memref<64x64xf32, #tpu.memory_space<vmem>>, vector<64x64xf32>
    %cst_23 = arith.constant dense<0.000000e+00> : vector<8x64xf32>
    %65 = tpu.matmul %63, %64, %cst_23 {dimension_numbers = #tpu.dot_dimension_numbers<[1], [0], [0], [1], [0, 0, 1, 1], [], []>} : vector<8x64xf32>, vector<64x64xf32>, vector<8x64xf32> -> vector<8x64xf32>
    %c0_24 = arith.constant 0 : index
    %c0_25 = arith.constant 0 : index
    %66 = vector.load %arg5[%c0_24, %c0_25] : memref<1x64xf32, #tpu.memory_space<vmem>>, vector<1x64xf32>
    %67 = vector.broadcast %66 : vector<1x64xf32> to vector<8x64xf32>
    %68 = arith.addf %65, %67 : vector<8x64xf32>
    %c0_26 = arith.constant 0 : index
    %c0_27 = arith.constant 0 : index
    %69 = vector.load %arg6[%c0_26, %c0_27] : memref<8x64xf32, #tpu.memory_space<vmem>>, vector<8x64xf32>
    tpu.vector_store %arg6[%c0_26, %c0_27], %68 {strides = array<i32>} : memref<8x64xf32, #tpu.memory_space<vmem>>, vector<8x64xf32>,
    return
  }
  func.func @transform_0(%arg0: i32) -> (i32, i32, i32) {
    %c0_i32 = arith.constant 0 : i32
    %c0_i32_0 = arith.constant 0 : i32
    %c0_i32_1 = arith.constant 0 : i32
    return %c0_i32, %arg0, %c0_i32_0 : i32, i32, i32
  }
  func.func @transform_1(%arg0: i32) -> (i32, i32) {
    %c0_i32 = arith.constant 0 : i32
    %c0_i32_0 = arith.constant 0 : i32
    %c0_i32_1 = arith.constant 0 : i32
    return %c0_i32, %c0_i32_0 : i32, i32
  }
  func.func @transform_2(%arg0: i32) -> (i32, i32) {
    %c0_i32 = arith.constant 0 : i32
    %c0_i32_0 = arith.constant 0 : i32
    %c0_i32_1 = arith.constant 0 : i32
    return %c0_i32, %c0_i32_0 : i32, i32
  }
  func.func @transform_3(%arg0: i32) -> (i32, i32) {
    %c0_i32 = arith.constant 0 : i32
    %c0_i32_0 = arith.constant 0 : i32
    %c0_i32_1 = arith.constant 0 : i32
    return %c0_i32, %c0_i32_0 : i32, i32
  }
  func.func @transform_4(%arg0: i32) -> (i32, i32) {
    %c0_i32 = arith.constant 0 : i32
    %c0_i32_0 = arith.constant 0 : i32
    %c0_i32_1 = arith.constant 0 : i32
    return %c0_i32, %c0_i32_0 : i32, i32
  }
  func.func @transform_5(%arg0: i32) -> (i32, i32) {
    %c0_i32 = arith.constant 0 : i32
    %c0_i32_0 = arith.constant 0 : i32
    return %arg0, %c0_i32 : i32, i32
  }
}

</mosaic_0001>

<bundles_post_ra>
// kernel: tpu_custom_call.1
= control target key start
LH: loop header
LB: loop body
LE: loop exit
PB: predicated region body
PF: predicated region fallthrough
CT: control target
= control target key end

     0   :  { %10 = vsyncpa [#allocation3], 0  ;;  %s747_s0 = inlined_call_operand.hbm [shape: f32[2,8,32], index: 0, kind: input, shape index: {}]   ;;  %s748_s1 = inlined_call_operand.hbm [shape: f32[64,256], index: 1, kind: input, shape index: {}]   ;;  %s749_s2 = inlined_call_operand.vmem [shape: f32[2,128], index: 2, kind: input, shape index: {}]   ;;  %s750_s3 = inlined_call_operand.hbm [shape: f32[64,64], index: 3, kind: input, shape index: {}]   ;;  %s751_s4 = inlined_call_operand.vmem [shape: f32[1,64], index: 4, kind: input, shape index: {}]   ;;  %s752_s5 = inlined_call_operand.hbm [shape: f32[8,64], index: 5, kind: output, shape index: {}]  }
   0x1   :  { %11 = vsyncpa [#allocation6], 0 }
   0x2   :  { %12 = vsyncpa [#allocation4], 0  ;;  %s631_s18 = smov [#allocation5]  }
   0x3   :  { %s30_s19 = sshll.u32 %s631_s18, 4  ;;  %s31_s19 = int_to_ptr.vmem [resolvable:$true] %s30_s19 }
   0x4   :  { %s553_s20 = scalar_lea.vmem %s31_s19, 2048  ;;  %p558_p1 = scmp.lt.s32.totalorder %s31_s19, %s31_s19 }
   0x5   :  { %p554_p0 = scmp.ne.s32.totalorder %s31_s19, %s553_s20  ;;  %p559_p2 = scmp.lt.s32.totalorder %s553_s20, %s553_s20 }
   0x7   :  { %p560_p3 = por %p559_p2, %p558_p1 }
   0x9   :  { %p561_p4 = pnand %p560_p3, %p554_p0 }
   0xb   :  { %564 = shalt.err (!%p561_p4)
}
   0xc   :  { %s632_s21 = smov 256   ;;  %s633_s22 = smov 16  }
   0xd   :  { %36 = dma.hbm_to_vmem [thread:$0]  %s748_s1, 2048, %s31_s19, [#allocation6], %s632_s21, %s632_s21, %s633_s22  }
   0xe   :  { %s634_s25 = smov [#allocation2]  }
   0xf   :  { %s18_s26 = sshll.u32 %s634_s25, 4  ;;  %s19_s26 = int_to_ptr.vmem [resolvable:$true] %s18_s26 }
  0x10   :  { %s573_s27 = scalar_lea.vmem %s19_s26, 256  ;;  %p578_p6 = scmp.lt.s32.totalorder %s19_s26, %s19_s26 }
  0x11   :  { %p574_p5 = scmp.ne.s32.totalorder %s19_s26, %s573_s27  ;;  %p579_p7 = scmp.lt.s32.totalorder %s573_s27, %s573_s27 }
  0x13   :  { %p580_p8 = por %p579_p7, %p578_p6 }
  0x15   :  { %p581_p9 = pnand %p580_p8, %p574_p5 }
  0x17   :  { %584 = shalt.err (!%p581_p9)
}
  0x18   :  { %s635_s28 = smov 128   ;;  %s636_s29 = smov 8  }
  0x19   :  { %24 = dma.hbm_to_vmem [thread:$0]  %s747_s0, 256, %s19_s26, [#allocation3], %s635_s28, %s635_s28, %s636_s29  }
  0x1a   :  { %s637_s7 = smov [#allocation7]  }
  0x1b   :  { %s44_s8 = sshll.u32 %s637_s7, 4  ;;  %s45_s8 = int_to_ptr.vmem [resolvable:$true] %s44_s8 }
  0x1c   :  { %s593_s1 = scalar_lea.vmem %s45_s8, 1024  ;;  %p598_p11 = scmp.lt.s32.totalorder %s45_s8, %s45_s8 }
  0x1d   :  { %p594_p10 = scmp.ne.s32.totalorder %s45_s8, %s593_s1  ;;  %p599_p12 = scmp.lt.s32.totalorder %s593_s1, %s593_s1 }
  0x1f   :  { %p600_p13 = por %p599_p12, %p598_p11 }
  0x21   :  { %p601_p0 = pnand %p600_p13, %p594_p10 }
  0x23   :  { %604 = shalt.err (!%p601_p0)
}
  0x24   :  { %50 = dma.hbm_to_vmem [thread:$0]  %s750_s3, 1024, %s45_s8, [#allocation6], %s635_s28, %s635_s28, %s636_s29  }
  0x25   :  { %625 = dma.done.wait [#allocation3], 256  }
  0x26   :  { %626 = vsyncadd [#allocation3], 4294967040 }
  0x27   :  { %627 = dma.done.wait [#allocation6], 3072  }
  0x28   :  { %628 = vsyncadd [#allocation6], 4294964224  ;;  %v638_v0 = vmov 0.0   ;;  %v77_v1 = vld [vmem:[#allocation5 + $0x78] sm:$0xff]  ;;  %v76_v2 = vld [vmem:[#allocation5 + $0x70] sm:$0xff]  ;;  %vm91_vm0 = vcmask 261120  }
  0x29   :  { %165 = vmatprep.mubr.f32.mxu0 %v638_v0  ;;  %306 = vmatprep.mubr.f32.mxu1 %v638_v0  ;;  %v75_v3 = vld [vmem:[#allocation5 + $0x68] sm:$0xff]  ;;  %v74_v4 = vld [vmem:[#allocation5 + $0x60] sm:$0xff]  ;;  %v73_v5 = vld [vmem:[#allocation5 + $0x58] sm:$0xff]  ;;  %vm94_vm1 = vcmask 523264   ;;  %s639_s13 = smov 32   ;;  %vm641_vm2 = vmmov 0  }
  0x2a   :  { %117 = vmatprep.subr.mxu0 %v77_v1  ;;  %258 = vmatprep.subr.mxu1 %v77_v1  ;;  %v72_v6 = vld [vmem:[#allocation5 + $0x50] sm:$0xff]  ;;  %v71_v7 = vld [vmem:[#allocation5 + $0x48] sm:$0xff]  ;;  %v70_v8 = vld [vmem:[#allocation5 + $0x40] sm:$0xff]  ;;  %s642_s16 = smov [#allocation8]  }
  0x2b   :  { %118 = vmatpush1.msra.mxu0 %v76_v2  ;;  %259 = vmatpush1.msra.mxu1 %v76_v2  ;;  %v69_v9 = vld [vmem:[#allocation5 + $0x38] sm:$0xff]  ;;  %v68_v10 = vld [vmem:[#allocation5 + $0x30] sm:$0xff]  ;;  %v67_v11 = vld [vmem:[#allocation5 + $0x28] sm:$0xff]  ;;  %s455_s17 = sshll.u32 %s642_s16, 4  ;;  %s456_s17 = int_to_ptr.vmem [resolvable:$true] %s455_s17 }
  0x2c   :  { %119 = vmatprep.subr.mxu0 %v75_v3  ;;  %260 = vmatprep.subr.mxu1 %v75_v3  ;;  %v66_v12 = vld [vmem:[#allocation5 + $0x20] sm:$0xff]  ;;  %v65_v13 = vld [vmem:[#allocation5 + $0x18] sm:$0xff]  ;;  %v64_v14 = vld [vmem:[#allocation5 + $0x10] sm:$0xff]  ;;  %s605_s18 = scalar_lea.vmem %s456_s17, 128  ;;  %p610_p2 = scmp.lt.s32.totalorder %s456_s17, %s456_s17 }
  0x2d   :  { %120 = vmatpush1.msra.mxu0 %v74_v4  ;;  %261 = vmatpush1.msra.mxu1 %v74_v4  ;;  %v684_v15 = vld [vmem:[#allocation2] sm:$0xff]  ;;  %v63_v16 = vld [vmem:[#allocation5 + $0x8] sm:$0xff]  ;;  %v62_v17 = vld [vmem:[#allocation5] sm:$0xff]  ;;  %p606_p1 = scmp.ne.s32.totalorder %s456_s17, %s605_s18  ;;  %p611_p3 = scmp.lt.s32.totalorder %s605_s18, %s605_s18 }
  0x2e   :  { %121 = vmatprep.subr.mxu0 %v73_v5  ;;  %262 = vmatprep.subr.mxu1 %v73_v5  ;;  %v92_v18 = vsel %vm91_vm0, %v684_v15, 0.0  ;;  %v688_v19 = vld [vmem:[#allocation2 + $0x8] sm:$0xff]  ;;  %v465_v21 = vld [vmem:[%s749_s2] ss:$0 sm:$0xff]  ;;  %v466_v26 = vld [vmem:[%s749_s2 + $0x1] ss:$0 sm:$0xff] }
  0x2f   :  { %122 = vmatpush1.msra.mxu0 %v72_v6  ;;  %263 = vmatpush1.msra.mxu1 %v72_v6  ;;  %v93_v20 = vsel %vm91_vm0, %v688_v19, 0.0  ;;  %s640_s2 = smov 96   ;;  %p612_p4 = por %p611_p3, %p610_p2 }
  0x30   :  { %123 = vmatprep.subr.mxu0 %v71_v7  ;;  %264 = vmatprep.subr.mxu1 %v71_v7 }
  0x31   :  { %124 = vmatpush1.msra.mxu0 %v70_v8  ;;  %265 = vmatpush1.msra.mxu1 %v70_v8  ;;  %p613_p5 = pnand %p612_p4, %p606_p1 }
  0x32   :  { %125 = vmatprep.subr.mxu0 %v69_v9  ;;  %266 = vmatprep.subr.mxu1 %v69_v9 }
  0x33   :  { %126 = vmatpush1.msra.mxu0 %v68_v10  ;;  %267 = vmatpush1.msra.mxu1 %v68_v10  ;;  %v367_v10 = vld [vmem:[#allocation7 + $0x38] sm:$0xff] }
  0x34   :  { %127 = vmatprep.subr.mxu0 %v67_v11  ;;  %268 = vmatprep.subr.mxu1 %v67_v11  ;;  %v366_v11 = vld [vmem:[#allocation7 + $0x30] sm:$0xff] }
  0x35   :  { %128 = vmatpush1.msra.mxu0 %v66_v12  ;;  %269 = vmatpush1.msra.mxu1 %v66_v12 }
  0x36   :  { %129 = vmatprep.subr.mxu0 %v65_v13  ;;  %270 = vmatprep.subr.mxu1 %v65_v13 }
  0x37   :  { %130 = vmatpush1.msra.mxu0 %v64_v14  ;;  %271 = vmatpush1.msra.mxu1 %v64_v14  ;;  %v365_v14 = vld [vmem:[#allocation7 + $0x28] sm:$0xff] }
  0x38   :  { %131 = vmatprep.subr.mxu0 %v63_v16  ;;  %272 = vmatprep.subr.mxu1 %v63_v16  ;;  %v364_v16 = vld [vmem:[#allocation7 + $0x20] sm:$0xff] }
  0x39   :  { %132 = vmatpush1.msra.mxu0 %v62_v17  ;;  %273 = vmatpush1.msra.mxu1 %v62_v17  ;;  %v363_v17 = vld [vmem:[#allocation7 + $0x18] sm:$0xff] }
  0x3a   :  { %467 = vmatmul.mubr.msk.f32.vlgmr.msra.gmra.mxu0 %vm94_vm1, %v92_v18  ;;  %486 = vmatprep.subr.mxu0 %v638_v0  ;;  %v362_v18 = vld [vmem:[#allocation7 + $0x10] sm:$0xff] }
  0x3b   :  { %170 = vmatprep.mubr.f32.mxu0 %v638_v0  ;;  %487 = vmatpush3.msra.mxu0 %v367_v10 }
  0x3c   :  { %488 = vmatprep.subr.mxu0 %v638_v0 }
  0x3d   :  { %489 = vmatpush3.msra.mxu0 %v366_v11 }
  0x3e   :  { %468 = vmatmul.mubr.msk.f32.gmra.mxu0 %vm94_vm1, %v93_v20  ;;  %490 = vmatprep.subr.mxu0 %v638_v0 }
  0x3f   :  { %491 = vmatpush3.msra.mxu0 %v365_v14  ;;  %502 = vmatprep.mubr.msk.f32.mxu0 %vm641_vm2, %v638_v0 }
  0x40   :  { %492 = vmatprep.subr.mxu0 %v638_v0 }
  0x41   :  { %493 = vmatpush3.msra.mxu0 %v364_v16 }
  0x42   :  { %494 = vmatprep.subr.mxu0 %v638_v0 }
  0x43   :  { %495 = vmatpush3.msra.mxu0 %v363_v17 }
  0x44   :  { %496 = vmatprep.subr.mxu0 %v638_v0 }
  0x45   :  { %497 = vmatpush3.msra.mxu0 %v362_v18 }
  0x46   :  { %498 = vmatprep.subr.mxu0 %v638_v0 }
  0xfa   :  { %v167_v22 = vpop.f32.mrf.mxu0 }
  0xfb   :  { %v176_v23 = vadd.f32 %v465_v21, %v167_v22 }
  0xfc   :  { %v169_v24 = vpop.f32.mrf.mxu0 }
  0xfd   :  { %517 = vtanh.f32 %v176_v23  ;;  %v469_v31 = vmul.f32 -1.442695, %v176_v23  ;;  %v360_v23 = vld [vmem:[#allocation7] sm:$0xff] }
  0xfe   :  { %v172_v25 = vpop.f32.mrf.mxu0 }
 0x100   :  { %v173_v27 = vpop.f32.mrf.mxu0 }
 0x101   :  { %v177_v28 = vadd.f32 %v466_v26, %v173_v27 }
 0x103   :  { %519 = vtanh.f32 %v177_v28  ;;  %v470_v32 = vmul.f32 -1.442695, %v177_v28 }
 0x104   :  { %521 = vpow2.f32 %v469_v31 }
 0x105   :  { %523 = vpow2.f32 %v470_v32  ;;  %v475_v32 = vld [vmem:[%s751_s4] ss:$0 sm:$0xff] }
 0x10a   :  { %v518_v29 = vpop.eup %517 }
 0x10b   :  { %196 = vrot.lane.b32.xlu0 %v518_v29, %s639_s13 }
 0x110   :  { %v520_v30 = vpop.eup %519 }
 0x111   :  { %198 = vrot.lane.b32.xlu0 %v520_v30, %s639_s13  ;;  %v522_v33 = vpop.eup %521 }
 0x112   :  { %v184_v34 = vadd.f32 1.0, %v522_v33  ;;  %v524_v35 = vpop.eup %523 }
 0x113   :  { %v185_v36 = vadd.f32 1.0, %v524_v35 }
 0x114   :  { %525 = vrcp.f32 %v184_v34 }
 0x115   :  { %527 = vrcp.f32 %v185_v36 }
 0x121   :  { %v526_v37 = vpop.eup %525 }
 0x122   :  { %v528_v40 = vpop.eup %527  ;;  %v192_v43 = vmul.f32 0.0, %v526_v37 }
 0x123   :  { %v193_v46 = vmul.f32 0.0, %v528_v40 }
 0x17d   :  { %v197_v38 = vpop.permute.xlu0 %196 }
 0x17e   :  { %v202_v39 = vmul.f32 %v526_v37, %v197_v38 }
 0x180   :  { %206 = vrot.lane.b32.xlu1 %v202_v39, %s639_s13 }
 0x183   :  { %v199_v41 = vpop.permute.xlu0 %198 }
 0x184   :  { %v203_v42 = vmul.f32 %v528_v40, %v199_v41 }
 0x186   :  { %208 = vrot.lane.b32.xlu1 %v203_v42, %s639_s13 }
 0x1f2   :  { %v207_v44 = vpop.permute.xlu1 %206 }
 0x1f3   :  { %v706_v45 = vadd.f32 %v207_v44, %v192_v43 }
 0x1f5   :  { %529 = vtanh.f32 %v706_v45 }
 0x1f8   :  { %v209_v47 = vpop.permute.xlu1 %208 }
 0x1f9   :  { %v709_v48 = vadd.f32 %v209_v47, %v193_v46 }
 0x1fb   :  { %531 = vtanh.f32 %v709_v48 }
 0x202   :  { %v530_v49 = vpop.eup %529 }
 0x203   :  { %218 = vrot.lane.b32.xlu0 %v530_v49, %s639_s13 }
 0x208   :  { %v532_v50 = vpop.eup %531 }
 0x209   :  { %220 = vrot.lane.b32.xlu1 %v532_v50, %s639_s13 }
 0x275   :  { %v219_v51 = vpop.permute.xlu0 %218 }
 0x276   :  { %v224_v52 = vmul.f32 %v526_v37, %v219_v51 }
 0x278   :  { %228 = vrot.lane.b32.xlu0 %v224_v52, %s640_s2 }
 0x27b   :  { %v221_v53 = vpop.permute.xlu1 %220 }
 0x27c   :  { %v225_v54 = vmul.f32 %v528_v40, %v221_v53 }
 0x27e   :  { %230 = vrot.lane.b32.xlu1 %v225_v54, %s640_s2 }
 0x2ea   :  { %v229_v55 = vpop.permute.xlu0 %228 }
 0x2eb   :  { %v234_v56 = vsel %vm91_vm0, %v688_v19, %v229_v55 }
 0x2ec   :  { %471 = vmatmul.mubr.msk.f32.vlgmr.msra.gmra.mxu1 %vm94_vm1, %v234_v56 }
 0x2ed   :  { %311 = vmatprep.mubr.f32.mxu1 %v638_v0 }
 0x2f0   :  { %v231_v57 = vpop.permute.xlu1 %230 }
 0x2f1   :  { %v235_v58 = vsel %vm91_vm0, %v684_v15, %v231_v57 }
 0x2f2   :  { %472 = vmatmul.mubr.msk.f32.gmra.mxu1 %vm94_vm1, %v235_v58 }
 0x3ac   :  { %v308_v59 = vpop.f32.mrf.mxu1 }
 0x3ad   :  { %v317_v60 = vadd.f32 %v465_v21, %v308_v59  ;;  %v361_v21 = vld [vmem:[#allocation7 + $0x8] sm:$0xff] }
 0x3ae   :  { %v310_v61 = vpop.f32.mrf.mxu1  ;;  %499 = vmatpush3.msra.mxu0 %v361_v21 }
 0x3af   :  { %533 = vtanh.f32 %v317_v60  ;;  %v473_v4 = vmul.f32 -1.442695, %v317_v60  ;;  %500 = vmatprep.subr.mxu0 %v638_v0 }
 0x3b0   :  { %501 = vmatpush3.msra.mxu0 %v360_v23 }
 0x3b2   :  { %v313_v62 = vpop.f32.mrf.mxu1 }
 0x3b4   :  { %v314_v63 = vpop.f32.mrf.mxu1 }
 0x3b5   :  { %v318_v1 = vadd.f32 %v466_v26, %v314_v63 }
 0x3b7   :  { %535 = vtanh.f32 %v318_v1  ;;  %v474_v5 = vmul.f32 -1.442695, %v318_v1 }
 0x3b8   :  { %537 = vpow2.f32 %v473_v4 }
 0x3b9   :  { %539 = vpow2.f32 %v474_v5 }
 0x3bc   :  { %v534_v2 = vpop.eup %533 }
 0x3bd   :  { %337 = vrot.lane.b32.xlu0 %v534_v2, %s639_s13 }
 0x3c4   :  { %v536_v3 = vpop.eup %535 }
 0x3c5   :  { %339 = vrot.lane.b32.xlu1 %v536_v3, %s639_s13  ;;  %v538_v6 = vpop.eup %537 }
 0x3c6   :  { %v325_v7 = vadd.f32 1.0, %v538_v6  ;;  %v540_v8 = vpop.eup %539 }
 0x3c7   :  { %v326_v9 = vadd.f32 1.0, %v540_v8 }
 0x3c8   :  { %541 = vrcp.f32 %v325_v7 }
 0x3c9   :  { %543 = vrcp.f32 %v326_v9 }
 0x3d5   :  { %v542_v12 = vpop.eup %541 }
 0x3d6   :  { %v544_v19 = vpop.eup %543  ;;  %v333_v24 = vmul.f32 %v542_v12, %v706_v45 }
 0x3d7   :  { %v334_v28 = vmul.f32 %v544_v19, %v709_v48 }
 0x42f   :  { %v338_v13 = vpop.permute.xlu0 %337 }
 0x430   :  { %v343_v15 = vmul.f32 %v542_v12, %v338_v13 }
 0x432   :  { %347 = vrot.lane.b32.xlu0 %v343_v15, %s639_s13 }
 0x437   :  { %v340_v20 = vpop.permute.xlu1 %339 }
 0x438   :  { %v344_v22 = vmul.f32 %v544_v19, %v340_v20 }
 0x43a   :  { %349 = vrot.lane.b32.xlu1 %v344_v22, %s639_s13 }
 0x4a4   :  { %v348_v25 = vpop.permute.xlu0 %347 }
 0x4a5   :  { %v353_v26 = vadd.f32 %v348_v25, %v333_v24 }
 0x4a7   :  { %356 = vrot.lane.b32.xlu0 %v353_v26, %s640_s2 }
 0x4ac   :  { %v350_v27 = vpop.permute.xlu1 %349 }
 0x4ad   :  { %v354_v29 = vadd.f32 %v350_v27, %v334_v28 }
 0x519   :  { %v357_v30 = vpop.permute.xlu0 %356 }
 0x51a   :  { %v359_v31 = vsel %vm91_vm0, %v357_v30, %v354_v29 }
 0x51b   :  { %503 = vmatmul.mubr.msk.f32.vlgmr.msra.gmra.mxu0 %vm94_vm1, %v359_v31 }
 0x5db   :  { %v444_v0 = vpop.f32.mrf.mxu0 }
 0x5dc   :  { %v445_v33 = vadd.f32 %v475_v32, %v444_v0 }
 0x5dd   :  { %v504_v34 = vpop.f32.mrf.mxu0 }
 0x5de   :  { %448 = vst.msk [vmem:[#allocation8] sm:$0xff] %vm94_vm1, %v445_v33 }
 0x5df   :  { %616 = shalt.err (!%p613_p5)
}
 0x5e0   :  { %458 = dma.vmem_to_hbm [thread:$0]  %s456_s17, 128, %s752_s5, [#allocation4]  }
 0x5e1   :  { %629 = dma.done.wait [#allocation4], 128  }
 0x5e2   :  { %630 = vsyncadd [#allocation4], 4294967168 }
 0x5e3   :  { %462 = vsyncpa [#allocation3], 1 }
 0x5e4   :  { %463 = vsyncpa [#allocation6], 1 }
 0x5e5   :  { %464 = vsyncpa [#allocation4], 1 }

</bundles_post_ra>
